<compile_context>
chip_gen: v6e
topology: v6e:2x2x1
jax: 0.10.0
libtpu: 0.0.40
codegen_flags: <defaults>
</compile_context>

<pallas_src>
import functools
import math

import jax
import jax.numpy as jnp
from jax.experimental import pallas as pl
from jax.experimental.pallas import tpu as pltpu


# -----------------------------------------------------------------------------
# Kernels
# -----------------------------------------------------------------------------

def _eca_kernel(w_ref, x_ref, *rest, K: int, pad: int, C: int,
                tiled: bool, use_halo: bool):
    """Channel-on-sublanes ECA kernel (one (ct, HW) channel slab per step).

    w_ref : SMEM (K,)  conv weights, pre-scaled by 1/HW
    x_ref : VMEM (ct, HW) channel slab of one batch element
    rest  : [lh_ref, rh_ref,] o_ref   (halo slabs only when use_halo)
    """
    if use_halo:
        lh_ref, rh_ref, o_ref = rest
    else:
        (o_ref,) = rest

    x = x_ref[...]                                   # native dtype, no f32 copy
    ct = x.shape[0]

    # Per-channel spatial sums, accumulated in f32, sublane-oriented (ct, 1).
    y = jnp.sum(x, axis=-1, keepdims=True, dtype=jnp.float32)

    if tiled:
        c = pl.program_id(1)
        c0 = c * ct
        # The last channel tile may be partial: rows past C hold undefined data
        # (no wrapper pad), so zero their pooled sums (this is exactly Conv1d's
        # zero padding seen by the valid edge channels); their outputs are
        # dropped by the masked writeback.
        row = jax.lax.broadcasted_iota(jnp.int32, (ct, 1), 0)
        y = jnp.where(row + c0 < C, y, 0.0)

    if pad > 0:
        if use_halo:
            gran = lh_ref.shape[0]
            yl = jnp.sum(lh_ref[...], axis=-1, keepdims=True, dtype=jnp.float32)
            yr = jnp.sum(rh_ref[...], axis=-1, keepdims=True, dtype=jnp.float32)
            # Left halo: last `pad` channels of the previous slab, zero at the
            # left array edge (Conv1d zero padding).
            yl = jnp.where(c > 0, yl[gran - pad:, :], 0.0)
            # Right halo: first `pad` channels of the next slab, zero once past
            # the real channel count (right edge / clamped or partial slab).
            rrow = jax.lax.broadcasted_iota(jnp.int32, (pad, 1), 0)
            yr = jnp.where(rrow + c0 + ct < C, yr[:pad, :], 0.0)
        else:
            yl = jnp.zeros((pad, 1), jnp.float32)
            yr = jnp.zeros((pad, 1), jnp.float32)
        ypad = jnp.concatenate([yl, y, yr], axis=0)  # (ct + 2*pad, 1)
    else:
        ypad = y

    # K-tap cross-correlation over channels via static sublane slices.
    # w is pre-scaled by 1/HW, so conv(sum) == conv(mean).
    acc = w_ref[0] * ypad[0:ct, :]
    for j in range(1, K):
        acc = acc + w_ref[j] * ypad[j:j + ct, :]

    scale = jax.nn.sigmoid(acc)                      # (ct, 1) f32 gate
    # Keep the gate in f32; the mixed multiply promotes per-vreg (no f32 copy
    # of x in VMEM) and matches the reference's f32-multiply-then-round.
    o_ref[...] = (x * scale).astype(o_ref.dtype)


def _roll2d(a, shift, axis):
    """jnp.roll semantics (result[i] = a[i - shift]) with a static shift,
    built from static slices + concatenate.  Only used on the tiny (R, g)
    pooled array, so the relayout cost is negligible (and off the VALU)."""
    n = a.shape[axis]
    shift = shift % n
    if shift == 0:
        return a
    if axis == 0:
        return jnp.concatenate([a[n - shift:, :], a[:n - shift, :]], axis=0)
    return jnp.concatenate([a[:, n - shift:], a[:, :n - shift]], axis=1)


def _eca_repack_kernel(w_ref, x_ref, bd_ref, bdt_ref, o_ref, *,
                       K: int, pad: int, C: int, g: int):
    """Lane-dense ECA kernel for HW % 128 != 0.

    x_ref : (R, g*HW)  each row packs g whole channels -> lane-dense stores
    bd_ref: (g*HW, g)  block-diagonal ones (x.dtype)  -> per-channel pooling
    bdt_ref:(g, g*HW)  its transpose (f32)            -> gate expansion
    """
    x = x_ref[...]                                   # (R, g*HW) native dtype
    R = x.shape[0]

    # (R, g) per-channel spatial sums; MXU is otherwise idle in this kernel.
    s = jnp.dot(x, bd_ref[...], preferred_element_type=jnp.float32)

    lane = jax.lax.broadcasted_iota(jnp.int32, (R, g), 1)
    chan = jax.lax.broadcasted_iota(jnp.int32, (R, g), 0) * g + lane

    # K-tap channel conv on the packed (R, g) layout.  Flat channel index is
    # r*g + lane; a tap offset d may cross a row boundary, handled by a second
    # row-shifted copy selected on the overflowing lanes.  Out-of-range
    # channels are masked to zero (Conv1d zero padding).
    acc = jnp.zeros((R, g), jnp.float32)
    for j in range(K):
        d = j - pad
        q0, rem = divmod(d, g)                       # d = q0*g + rem, 0 <= rem < g
        a = s
        r_sh = (-q0) % R
        if r_sh:
            a = _roll2d(a, r_sh, 0)                  # a[r, l] = s[r+q0, l]
        l_sh = (-rem) % g
        if l_sh:
            a = _roll2d(a, l_sh, 1)                  # a[r, l] = s[r+q0, l+rem]
        if rem and R > 1:
            b = _roll2d(a, R - 1, 0)                 # b[r, l] = s[r+q0+1, l+rem]
            sh = jnp.where(lane + rem < g, a, b)
        else:
            sh = a
        valid = (chan + d >= 0) & (chan + d < C)
        acc = acc + w_ref[j] * jnp.where(valid, sh, 0.0)

    gate = jax.nn.sigmoid(acc)                       # (R, g) f32
    # Broadcast each channel's gate across its HW segment (exact: one-hot).
    ge = jnp.dot(gate, bdt_ref[...], preferred_element_type=jnp.float32)
    o_ref[...] = (x * ge).astype(o_ref.dtype)        # lane-dense store


# -----------------------------------------------------------------------------
# Wrapper
# -----------------------------------------------------------------------------

def _tpu_params():
    """Best-effort (physical VMEM bytes per TensorCore, TensorCores per chip)."""
    vmem = 128 << 20
    cores = 1
    try:
        info = pltpu.get_tpu_info()
        vmem = int(getattr(info, "vmem_capacity_bytes", vmem))
    except Exception:
        pass
    try:
        kind = jax.devices()[0].device_kind.lower()
    except Exception:
        kind = ""
    if "v7" in kind:                                 # 2 TCs, 64 MiB VMEM per TC
        cores = 2
        vmem = min(vmem, 64 << 20)
    return vmem, cores


def _vmem_limit(needed_bytes, phys_vmem):
    cap = (phys_vmem * 3) // 4                       # headroom for compiler scratch
    return int(min(max((needed_bytes * 5) // 4, 32 << 20), cap))


def _choose_channel_tile(C, HW, itemsize, gran, N, cores, ws_budget):
    """Prefer a single tile covering all channels (no halo traffic); split only
    when it doesn't fit the budget, or to feed a second TensorCore when N==1."""
    bpc = HW * itemsize
    single_ws = 4 * C * bpc                          # double-buffered in + out
    want_split = cores >= 2 and N == 1 and C > 2 * gran
    if single_ws <= ws_budget and not want_split:
        return C, 1
    # Largest ct (multiple of gran) whose double-buffered in/out tiles plus two
    # halo slabs fit the budget.
    ct = (ws_budget // (4 * bpc) - gran) // gran * gran
    ct = max(gran, ct)
    if want_split:
        half = -(-C // 2)
        half = -(-half // gran) * gran
        ct = min(ct, half)
    ct = min(ct, -(-C // gran) * gran)
    n_ct = -(-C // ct)
    # TODO(synk): add spatial (HW) tiling for the extreme case where even one
    # gran-channel slab exceeds the VMEM budget.
    return ct, n_ct


def eca_forward(x: jax.Array, w: jax.Array, *, _force_channel_tile=None) -> jax.Array:
    """ECA forward. x: (N, C, H, W); w: (K,) Conv1d(1, 1, K, bias=False) weights."""
    N, C, H, W = x.shape
    K = int(w.shape[0])
    pad = K // 2
    HW = H * W
    dtype = x.dtype
    itemsize = jnp.dtype(dtype).itemsize

    phys_vmem, cores = _tpu_params()
    ws_budget = min(phys_vmem // 3, 40 << 20)

    # Fold the 1/HW of the mean into the conv weights: conv(mean) = conv(sum)/HW.
    wk = w.astype(jnp.float32) * (1.0 / HW)

    # ---- Path 2: lane-dense repack for the common HW % 128 != 0 sizes --------
    g = 128 // math.gcd(HW, 128)
    if (_force_channel_tile is None and HW % 128 != 0 and g >= 32
            and C % g == 0 and pad < g):
        R = C // g
        bd_bytes = (g * HW) * g * itemsize
        bdt_bytes = g * (g * HW) * 4
        repack_ws = 4 * C * HW * itemsize + 2 * (bd_bytes + bdt_bytes)
        if R >= 2 and repack_ws <= ws_budget:
            xg = x.reshape(N, R, g * HW)             # contiguous view, no copy
            seg = jnp.arange(g * HW, dtype=jnp.int32) // HW
            onehot = seg[:, None] == jnp.arange(g, dtype=jnp.int32)[None, :]
            bd = onehot.astype(dtype)                # (g*HW, g): pooling
            bdt = onehot.T.astype(jnp.float32)       # (g, g*HW): gate expansion
            out = pl.pallas_call(
                functools.partial(_eca_repack_kernel, K=K, pad=pad, C=C, g=g),
                out_shape=jax.ShapeDtypeStruct((N, R, g * HW), dtype),
                grid=(N,),
                in_specs=[
                    pl.BlockSpec(memory_space=pltpu.MemorySpace.SMEM),
                    pl.BlockSpec((None, R, g * HW), lambda n: (n, 0, 0)),
                    pl.BlockSpec((g * HW, g), lambda n: (0, 0)),   # resident
                    pl.BlockSpec((g, g * HW), lambda n: (0, 0)),   # resident
                ],
                out_specs=pl.BlockSpec((None, R, g * HW), lambda n: (n, 0, 0)),
                compiler_params=pltpu.CompilerParams(
                    dimension_semantics=("parallel",),
                    vmem_limit_bytes=_vmem_limit(repack_ws, phys_vmem)),
                cost_estimate=pl.CostEstimate(
                    flops=int(4 * N * C * HW * g + 3 * N * C * HW),
                    transcendentals=int(N * C),
                    bytes_accessed=int(2 * N * C * HW * itemsize
                                       + bd_bytes + bdt_bytes)),
            )(wk, xg, bd, bdt)
            return out.reshape(N, C, H, W)

    # ---- Path 1: channel-on-sublanes (single tile or halo-tiled) -------------
    x3 = x.reshape(N, C, HW)                         # contiguous view, no copy
    gran = max(8, 32 // itemsize)                    # sublane granularity
    if _force_channel_tile is not None:
        ct = int(_force_channel_tile)
        n_ct = -(-C // ct)
    else:
        ct, n_ct = _choose_channel_tile(C, HW, itemsize, gran, N, cores, ws_budget)
    tiled = n_ct > 1
    use_halo = tiled and pad > 0
    if use_halo and pad > gran:
        raise ValueError("ECA kernel size too large for the halo slab")

    kern = functools.partial(_eca_kernel, K=K, pad=pad, C=C,
                             tiled=tiled, use_halo=use_halo)

    if tiled:
        nb = ct // gran
        last_slab = -(-C // gran) - 1
        x_map = lambda n, c: (n, c, 0)
        in_specs = [pl.BlockSpec(memory_space=pltpu.MemorySpace.SMEM),
                    pl.BlockSpec((None, ct, HW), x_map)]
        args = [wk, x3]
        if use_halo:
            lh_map = lambda n, c: (n, jnp.maximum(c * nb - 1, 0), 0)
            rh_map = lambda n, c: (n, jnp.minimum((c + 1) * nb, last_slab), 0)
            in_specs += [pl.BlockSpec((None, gran, HW), lh_map),
                         pl.BlockSpec((None, gran, HW), rh_map)]
            args += [x3, x3]
        out_spec = pl.BlockSpec((None, ct, HW), x_map)
        grid = (N, n_ct)
        dims = ("parallel", "parallel")
        needed = (4 * ct + (4 * gran if use_halo else 0)) * HW * itemsize
        halo_bytes = (2 * gran * HW * itemsize) * N * n_ct if use_halo else 0
    else:
        x_map = lambda n: (n, 0, 0)
        in_specs = [pl.BlockSpec(memory_space=pltpu.MemorySpace.SMEM),
                    pl.BlockSpec((None, C, HW), x_map)]
        args = [wk, x3]
        out_spec = pl.BlockSpec((None, C, HW), x_map)
        grid = (N,)
        dims = ("parallel",)
        needed = 4 * C * HW * itemsize
        halo_bytes = 0

    out = pl.pallas_call(
        kern,
        out_shape=jax.ShapeDtypeStruct((N, C, HW), dtype),
        grid=grid,
        in_specs=in_specs,
        out_specs=out_spec,
        compiler_params=pltpu.CompilerParams(
            dimension_semantics=dims,
            vmem_limit_bytes=_vmem_limit(needed, phys_vmem)),
        cost_estimate=pl.CostEstimate(
            flops=int(3 * N * C * HW + 2 * N * C * K),
            transcendentals=int(N * C),
            bytes_accessed=int(2 * N * C * HW * itemsize + halo_bytes)),
    )(*args)
    return out.reshape(N, C, H, W)


# -----------------------------------------------------------------------------
# Reference + test
# -----------------------------------------------------------------------------

def eca_kernel_size(in_channels: int, gamma: int = 2, b: int = 1) -> int:
    t = int(abs((math.log(in_channels, 2) + b) / gamma))
    return t if t % 2 else t + 1


def _eca_reference(x, w):
    # Pure-JAX reference mirroring the PyTorch forward (f32 math, then cast).
    N, C, H, W = x.shape
    K = w.shape[0]
    pad = K // 2
    y = jnp.mean(x.astype(jnp.float32), axis=(2, 3))           # (N, C)
    yp = jnp.pad(y, ((0, 0), (pad, pad)))                       # zero-padded channels
    conv = jnp.zeros_like(y)
    for j in range(K):
        conv = conv + w[j] * yp[:, j:j + C]
    scale = jax.nn.sigmoid(conv)                                # (N, C)
    return (x.astype(jnp.float32) * scale[:, :, None, None]).astype(x.dtype)


if __name__ == "__main__":
    key = jax.random.PRNGKey(0)
    cases = [
        # (shape, dtype, atol, rtol, forced channel tile)
        ((2, 64, 16, 16), jnp.float32, 1e-5, 1e-5, None),   # single-tile fused path, K=3
        ((1, 72, 8, 8), jnp.float32, 1e-5, 1e-5, 16),       # halo-tiled path + C tail mask
        ((2, 20, 8, 8), jnp.bfloat16, 2e-2, 2e-2, None),    # unaligned C, bf16 rescale
        ((1, 1024, 7, 7), jnp.bfloat16, 2e-2, 2e-2, None),  # lane-dense repack (HW=49, K=5)
    ]
    for i, (shape, dtype, atol, rtol, ft) in enumerate(cases):
        key, sub = jax.random.split(key)
        kx, kw = jax.random.split(sub)
        N, C, H, W = shape
        K = eca_kernel_size(C)
        x = jax.random.normal(kx, shape, dtype=jnp.float32).astype(dtype)
        bound = 1.0 / math.sqrt(K)   # Conv1d kaiming-uniform-like init
        w = jax.random.uniform(kw, (K,), dtype=jnp.float32,
                               minval=-bound, maxval=bound)
        out = eca_forward(x, w, _force_channel_tile=ft)
        jax.block_until_ready(out)
        ref = _eca_reference(x, w)
        assert jnp.allclose(out.astype(jnp.float32), ref.astype(jnp.float32),
                            atol=atol, rtol=rtol), (
            f"mismatch vs reference (case {i}: shape={shape}, dtype={dtype})")
    print("KERNEL_OK")
</pallas_src>

<mosaic_0001>
module attributes {stable_mosaic.version = 11 : i64} {
  func.func @_eca_kernel(%arg0: i32, %arg1: memref<3xf32, #tpu.memory_space<smem>>, %arg2: memref<1x64x256xf32, #tpu.memory_space<vmem>>, %arg3: memref<1x64x256xf32, #tpu.memory_space<vmem>>) attributes {dimension_semantics = [#tpu.dimension_semantics<parallel>], iteration_bounds = array<i64: 2>, scalar_prefetch = 0 : i64, scratch_operands = 0 : i64, tpu.core_type = #tpu.core_type<tc>, window_params = [{transform_indices = @transform_0, window_bounds = array<i64: 3>}, {transform_indices = @transform_1, window_bounds = array<i64: 1, 64, 256>}, {transform_indices = @transform_2, window_bounds = array<i64: 1, 64, 256>}]} {
    %c0 = arith.constant 0 : index
    %c0_0 = arith.constant 0 : index
    %c0_1 = arith.constant 0 : index
    %0 = vector.load %arg2[%c0, %c0_0, %c0_1] : memref<1x64x256xf32, #tpu.memory_space<vmem>>, vector<1x64x256xf32>
    %1 = vector.shape_cast %0 : vector<1x64x256xf32> to vector<64x256xf32>
    %cst = arith.constant dense<0.000000e+00> : vector<64xf32>
    %2 = vector.multi_reduction <add>, %1, %cst [1] : vector<64x256xf32> to vector<64xf32>
    %3 = vector.shape_cast %2 : vector<64xf32> to vector<64x1xf32>
    %cst_2 = arith.constant 0.000000e+00 : f32
    %4 = vector.broadcast %cst_2 : f32 to vector<1x1xf32>
    %cst_3 = arith.constant 0.000000e+00 : f32
    %5 = vector.broadcast %cst_3 : f32 to vector<1x1xf32>
    %6 = tpu.concatenate %4, %3, %5 in 0 : vector<1x1xf32>, vector<64x1xf32>, vector<1x1xf32> -> vector<66x1xf32>
    %c0_4 = arith.constant 0 : index
    %7 = memref.load %arg1[%c0_4] : memref<3xf32, #tpu.memory_space<smem>>
    %8 = vector.extract_strided_slice %6 {offsets = [0, 0], sizes = [64, 1], strides = [1, 1]} : vector<66x1xf32> to vector<64x1xf32>
    %9 = vector.broadcast %7 : f32 to vector<64x1xf32>
    %10 = arith.mulf %9, %8 : vector<64x1xf32>
    %c1 = arith.constant 1 : index
    %11 = memref.load %arg1[%c1] : memref<3xf32, #tpu.memory_space<smem>>
    %12 = vector.extract_strided_slice %6 {offsets = [1, 0], sizes = [64, 1], strides = [1, 1]} : vector<66x1xf32> to vector<64x1xf32>
    %13 = vector.broadcast %11 : f32 to vector<64x1xf32>
    %14 = arith.mulf %13, %12 : vector<64x1xf32>
    %15 = arith.addf %10, %14 : vector<64x1xf32>
    %c2 = arith.constant 2 : index
    %16 = memref.load %arg1[%c2] : memref<3xf32, #tpu.memory_space<smem>>
    %17 = vector.extract_strided_slice %6 {offsets = [2, 0], sizes = [64, 1], strides = [1, 1]} : vector<66x1xf32> to vector<64x1xf32>
    %18 = vector.broadcast %16 : f32 to vector<64x1xf32>
    %19 = arith.mulf %18, %17 : vector<64x1xf32>
    %20 = arith.addf %15, %19 : vector<64x1xf32>
    %21 = arith.negf %20 : vector<64x1xf32>
    %22 = math.exp %21 : vector<64x1xf32>
    %cst_5 = arith.constant 1.000000e+00 : f32
    %23 = vector.broadcast %cst_5 : f32 to vector<64x1xf32>
    %24 = arith.addf %23, %22 : vector<64x1xf32>
    %25 = arith.divf %23, %24 : vector<64x1xf32>
    %26 = vector.broadcast %25 : vector<64x1xf32> to vector<64x256xf32>
    %27 = arith.mulf %1, %26 : vector<64x256xf32>
    %c0_6 = arith.constant 0 : index
    %c0_7 = arith.constant 0 : index
    %c0_8 = arith.constant 0 : index
    %28 = vector.load %arg3[%c0_6, %c0_7, %c0_8] : memref<1x64x256xf32, #tpu.memory_space<vmem>>, vector<1x64x256xf32>
    %29 = vector.shape_cast %28 : vector<1x64x256xf32> to vector<64x256xf32>
    %30 = vector.shape_cast %27 : vector<64x256xf32> to vector<1x64x256xf32>
    tpu.vector_store %arg3[%c0_6, %c0_7, %c0_8], %30 {strides = array<i32>} : memref<1x64x256xf32, #tpu.memory_space<vmem>>, vector<1x64x256xf32>,
    return
  }
  func.func @transform_0(%arg0: i32) -> i32 {
    %c0_i32 = arith.constant 0 : i32
    %c0_i32_0 = arith.constant 0 : i32
    return %c0_i32 : i32
  }
  func.func @transform_1(%arg0: i32) -> (i32, i32, i32) {
    %c0_i32 = arith.constant 0 : i32
    %c0_i32_0 = arith.constant 0 : i32
    %c0_i32_1 = arith.constant 0 : i32
    return %arg0, %c0_i32, %c0_i32_0 : i32, i32, i32
  }
  func.func @transform_2(%arg0: i32) -> (i32, i32, i32) {
    %c0_i32 = arith.constant 0 : i32
    %c0_i32_0 = arith.constant 0 : i32
    %c0_i32_1 = arith.constant 0 : i32
    return %arg0, %c0_i32, %c0_i32_0 : i32, i32, i32
  }
}

</mosaic_0001>

<bundles_post_ra>
// kernel: tpu_custom_call.1
= control target key start
LH: loop header
LB: loop body
LE: loop exit
PB: predicated region body
PF: predicated region fallthrough
CT: control target
= control target key end

     0   :  { %7 = vsyncpa [#allocation5], 0  ;;  %s1159_s0 = inlined_call_operand.hbm [shape: f32[3], index: 0, kind: input, shape index: {}]   ;;  %s1160_s1 = inlined_call_operand.hbm [shape: f32[2,64,256], index: 1, kind: input, shape index: {}]   ;;  %s1161_s2 = inlined_call_operand.hbm [shape: f32[2,64,256], index: 2, kind: output, shape index: {}]  }
   0x1   :  { %8 = vsyncpa [#allocation3], 0 }
   0x2   :  { %10 = vsyncpa [#allocation3 + $0x1], 0 }
   0x3   :  { %11 = vsyncpa [#allocation4], 0 }
   0x4   :  { %13 = vsyncpa [#allocation4 + $0x1], 0  ;;  %s842_s9 = smov 0   ;;  %s844_s10 = smov 0  }
   0x5   :  { %s846_s11 = smov 0   ;;  %s848_s12 = smov 0  }
   0x6 LB: > { %s863_s13 = sadd.s32 4294967295, %s817_s12   ;;  %s586_s14 = sadd.s32 4294967294, %s817_s12   ;;  %s817_s12 = sphi %s848_s12, %s1183_s12   ;;  %s813_s11 = sphi %s846_s11, %s1182_s11   ;;  %s809_s10 = sphi %s844_s10, %s1181_s10   ;;  %s805_s9 = sphi %s842_s9, %s1180_s9  }
   0x7   : > { %s867_s15 = sadd.s32 1, %s817_s12   ;;  %s47_s16 = sadd.s32 1, %s813_s11 }
   0x8   : > { %s44_s17 = ssub.s32 %s817_s12, %s867_s15  ;;  %p54_p0 = scmp.ne.s32.totalorder %s813_s11, %s809_s10 }
   0x9   : > { %p45_p1 = scmp.eq.s32.totalorder %s44_s17, 0  ;;  %p55_p2 = scmp.eq.s32.totalorder %s817_s12, 0 }
   0xa   : > { %p60_p3 = scmp.ne.s32.totalorder %s809_s10, %s805_s9  ;;  %p1162_p4 = scmp.eq.s32.totalorder %s863_s13, 0 }
   0xb   : > { %s879_s18 = scalar_select %p45_p1, %s813_s11, %s47_s16  }
   0xc   : > { %p881_p5 = por %p55_p2, %p54_p0  ;;  %p887_p6 = por %p1162_p4, %p60_p3 }
   0xd   : > { %p84_p7 = scmp.eq.s32.totalorder %s863_s13, 1  ;;  %p90_p8 = scmp.eq.s32.totalorder %s586_s14, 1 }
   0xe   : > { %s1167_s20 = scalar_select %p887_p6, 1, 0 }
   0xf   : > { %p587_p9 = scmp.ge.s32.totalorder %s817_s12, 1  ;;  %p97_p10 = scmp.lt.s32.totalorder %s817_s12, 3 }
  0x10   : > { %p894_p11 = por %p84_p7, %p54_p0  ;;  %p898_p12 = por %p90_p8, %p60_p3 }
  0x11   : > { %p902_p13 = pnand %p587_p9, %p97_p10  ;;  %p635_p4 = scmp.lt.s32.totalorder %s817_s12, 2 }
  0x12   : > { %s1168_s21 = scalar_select %p894_p11, 1, 0 }
  0x13   : > { %s1169_s22 = scalar_select %p898_p12, 1, 0 }
  0x14   : > { %s1170_s23 = scalar_select %p902_p13, 1, 0 }
  0x15   : > { %p622_p2 = pneg %p902_p13  ;;  %s119_s24 = sand.u32 1, %s813_s11  }
  0x16   : > { %s612_s25 = sshll.u32 %s817_s12, 11  ;;  %p1171_p6 = scmp.eq.s32.totalorder %s863_s13, 0 }
  0x17   : > { %p916_p7 = pnand %p635_p4, %p881_p5  ;;  %s590_s27 = sshll.u32 %s119_s24, 7 }
  0x18   : > { %p623_p0 = pnand %p622_p2, %p1171_p6  ;;  %s819_s28 = smov [#allocation2]  }
  0x19   : > { %s926_s5 = scalar_lea.hbm %s1160_s1, %s612_s25  ;;  %s123_s6 = scalar_lea.vmem [#allocation6], %s590_s27 }
  0x1a   : > { %625 = dma.hbm_to_smem (!%p623_p0), %s1159_s0, 16, %s819_s28, [#allocation5]  }
  0x1b   : > { %s130_s7 = sshll.u32 %s123_s6, 4  ;;  %s930_s8 = scalar_lea.sflag [#allocation3], %s119_s24  ;;  %s928_s7 = int_to_ptr.vmem [resolvable:$true] %s130_s7 }
  0x1c   : > { %s721_s14 = scalar_lea.hbm %s926_s5, 2048  ;;  %p723_p4 = pneg %p916_p7 }
  0x1d   : > { %p722_p3 = scmp.ne.s32.totalorder %s926_s5, %s721_s14  ;;  %s726_s19 = scalar_lea.hbm %s1160_s1, 4096 }
  0x1e   : > { %p727_p8 = scmp.lt.s32.totalorder %s926_s5, %s1160_s1  ;;  %p728_p9 = scmp.lt.s32.totalorder %s726_s19, %s721_s14 }
  0x1f   : > { %p724_p5 = pnand %p723_p4, %p722_p3 }
  0x20   : > { %p729_p10 = por %p728_p9, %p727_p8 }
  0x21   : > { %p725_p6 = pneg %p724_p5 }
  0x23   : > { %p730_p2 = pnand %p729_p10, %p725_p6 }
  0x25   : > { %733 = shalt.err (!%p730_p2)
}
  0x26   : > { %s734_s24 = scalar_lea.vmem %s928_s7, 2048  ;;  %s820_s27 = smov [#allocation6]  }
  0x27   : > { %p735_p0 = scmp.ne.s32.totalorder %s928_s7, %s734_s24  ;;  %s739_s29 = sshll.u32 %s820_s27, 4  ;;  %s740_s29 = int_to_ptr.vmem [resolvable:$false] %s739_s29 }
  0x28   : > { %s741_s30 = scalar_lea.vmem %s740_s29, 4096  ;;  %p742_p5 = scmp.lt.s32.totalorder %s928_s7, %s740_s29 }
  0x29   : > { %p737_p1 = pnand %p735_p0, %p723_p4  ;;  %p743_p12 = scmp.lt.s32.totalorder %s741_s30, %s734_s24 }
  0x2b   : > { %p738_p3 = pneg %p737_p1  ;;  %p744_p11 = por %p743_p12, %p742_p5 }
  0x2d   : > { %p745_p13 = pnand %p744_p11, %p738_p3 }
  0x2f   : > { %748 = shalt.err (!%p745_p13)
}
  0x30   : > { %s821_s3 = smov 256   ;;  %s822_s4 = smov 16  }
  0x31   : > { %629 = dma.hbm_to_vmem [thread:$0]  (!%p916_p7), %s926_s5, 2048, %s928_s7, %s930_s8, %s821_s3, %s821_s3, %s822_s4  }
  0x32   : > { %p1173_p4 = scmp.ne.s32.totalorder %s1170_s23, 0 }
  0x33   : > { %p1174_p1 = scmp.eq.s32.totalorder (!%p1173_p4), %s863_s13, 0 }
  0x34   : > { %142 = sbr.rel (%p1173_p4) target bundleno = 419 (0x1a3), region = 28 }
  0x39   : > { %792 = dma.done.wait (%p1174_p1), [#allocation5], 16   ;;  %p1175_p6 = pmov %p1174_p1 }
  0x3a   : > { %s958_s6 = sand.u32 1, %s809_s10   ;;  %p1176_p11 = scmp.ne.s32.totalorder %s1167_s20, 0 }
  0x3b   : > { %794 = vsyncadd (%p1175_p6), [#allocation5], 4294967280  ;;  %s595_s14 = sshll.u32 %s958_s6, 7  ;;  %s149_s16 = scalar_lea.sflag [#allocation3], %s958_s6 }
  0x3c   : > { %s152_s26 = scalar_lea.vmem [#allocation6], %s595_s14 }
  0x3d   : > { %796 = dma.done.wait (%p1176_p11), %s149_s16, 2048  }
  0x3e   : > { %798 = vsyncadd (%p1176_p11), %s149_s16, 4294965248 }
  0x3f   : > { %157 = sfence }
  0x40   : > { %v968_v0 = vld [vmem:[%s152_s26 + $0x20] sm:$0xff]  ;;  %v970_v1 = vld [vmem:[%s152_s26 + $0x28] sm:$0xff]  ;;  %v978_v5 = vld [vmem:[%s152_s26 + $0x30] sm:$0xff]  ;;  %v823_v24 = vmov 0   ;;  %s597_s20 = sld [smem:[#allocation2 + $0x1]]  ;;  %vm222_vm0 = vcmask 1040384  }
  0x41   : > { %v972_v2 = vld [vmem:[%s152_s26] sm:$0xff]  ;;  %v196_v3 = vadd.f32 %v970_v1, %v968_v0  ;;  %v976_v4 = vld [vmem:[%s152_s26 + $0x8] sm:$0xff]  ;;  %v980_v6 = vld [vmem:[%s152_s26 + $0x38] sm:$0xff]  ;;  %677 = vset.pattern.permute.xlu1 %v823_v24  ;;  %676 = vset.pattern.permute.xlu0 %v823_v24  ;;  %s598_s23 = sld [smem:[#allocation2 + $0x2]]  ;;  %vm279_vm1 = vcmask 1046528   ;;  %vm333_vm2 = vcmask 1045504  }
  0x42   : > { %v190_v7 = vadd.f32 %v976_v4, %v972_v2  ;;  %v984_v8 = vld [vmem:[%s152_s26 + $0x10] sm:$0xff]  ;;  %v986_v9 = vld [vmem:[%s152_s26 + $0x18] sm:$0xff]  ;;  %v199_v10 = vadd.f32 %v980_v6, %v978_v5  ;;  %v996_v14 = vld [vmem:[%s152_s26 + $0x40] sm:$0xff]  ;;  %s249_s5 = sld [smem:[#allocation2]]  ;;  %s1079_s7 = scalar_lea.vmem [#allocation7], %s595_s14 }
  0x43   : > { %197 = vadd.xlane.f32.xlu1 %v196_v3  ;;  %v193_v11 = vadd.f32 %v986_v9, %v984_v8  ;;  %v992_v12 = vld [vmem:[%s152_s26 + $0x50] sm:$0xff]  ;;  %v994_v13 = vld [vmem:[%s152_s26 + $0x58] sm:$0xff]  ;;  %v998_v15 = vld [vmem:[%s152_s26 + $0x48] sm:$0xff]  ;;  %s613_s8 = sshll.u32 %s863_s13, 11  ;;  %s501_s17 = sshll.u32 %s1079_s7, 4  ;;  %s1112_s17 = int_to_ptr.vmem [resolvable:$true] %s501_s17 }
  0x44   : > { %191 = vadd.xlane.f32.xlu0 %v190_v7  ;;  %v205_v16 = vadd.f32 %v994_v13, %v992_v12  ;;  %v202_v17 = vadd.f32 %v998_v15, %v996_v14  ;;  %v1004_v18 = vld [vmem:[%s152_s26 + $0x70] sm:$0xff]  ;;  %v1006_v19 = vld [vmem:[%s152_s26 + $0x78] sm:$0xff]  ;;  %v1008_v20 = vld [vmem:[%s152_s26 + $0x60] sm:$0xff]  ;;  %s1110_s28 = scalar_lea.hbm %s1161_s2, %s613_s8  ;;  %s488_s13 = scalar_lea.sflag [#allocation4], %s958_s6 }
  0x45   : > { %v1010_v21 = vld [vmem:[%s152_s26 + $0x68] sm:$0xff]  ;;  %v211_v22 = vadd.f32 %v1006_v19, %v1004_v18  ;;  %s749_s24 = scalar_lea.vmem %s1112_s17, 2048  ;;  %p1177_p13 = scmp.ne.s32.totalorder %s1168_s21, 0 }
  0x46   : > { %v208_v23 = vadd.f32 %v1010_v21, %v1008_v20  ;;  %v1016_v27 = vstv %s597_s20  ;;  %p750_p12 = scmp.ne.s32.totalorder %s1112_s17, %s749_s24  ;;  %s824_s27 = smov [#allocation7]  }
  0x47   : > { %200 = vadd.xlane.f32.xlu1 %v199_v10  ;;  %v1018_v30 = vstv %s598_s23  ;;  %s753_s29 = sshll.u32 %s824_s27, 4  ;;  %s754_s29 = int_to_ptr.vmem [resolvable:$false] %s753_s29 }
  0x48   : > { %194 = vadd.xlane.f32.xlu0 %v193_v11  ;;  %v1021_v33 = vstv %s249_s5  ;;  %p751_p7 = pnand %p750_p12, %p1177_p13  ;;  %s755_s30 = scalar_lea.vmem %s754_s29, 4096 }
  0x49   : > { %p756_p9 = scmp.lt.s32.totalorder %s1112_s17, %s754_s29  ;;  %p757_p10 = scmp.lt.s32.totalorder %s755_s30, %s749_s24 }
  0x4a   : > { %p752_p8 = pneg %p751_p7 }
  0x4b   : > { %206 = vadd.xlane.f32.xlu1 %v205_v16  ;;  %p758_p2 = por %p757_p10, %p756_p9 }
  0x4c   : > { %203 = vadd.xlane.f32.xlu0 %v202_v17 }
  0x4d   : > { %p759_p0 = pnand %p758_p2, %p752_p8 }
  0x4f   : > { %212 = vadd.xlane.f32.xlu1 %v211_v22 }
  0x50   : > { %209 = vadd.xlane.f32.xlu0 %v208_v23 }
  0xcc   : > { %v198_v25 = vpop.xlane.xlu1 %197 }
  0xcd   : > { %v192_v26 = vpop.xlane.xlu0 %191  ;;  %v226_v29 = vrot.slane %v198_v25, 7 }
  0xce   : > { %v223_v28 = vrot.slane %v192_v26, 7 }
  0xd0   : > { %v247_v31 = vsel %vm222_vm0, 0.0, %v223_v28  ;;  %v201_v32 = vpop.xlane.xlu1 %200 }
  0xd1   : > { %v261_v34 = vmul.f32 %v1016_v27, %v247_v31  ;;  %v228_v35 = vrot.slane %v201_v32, 7  ;;  %v195_v36 = vpop.xlane.xlu0 %194  ;;  %v315_v37 = vmul.f32 %v1018_v30, %v247_v31  ;;  %v251_v40 = vmul.f32 %v1021_v33, %v247_v31 }
  0xd2   : > { %v224_v38 = vrot.slane %v195_v36, 7 }
  0xd3   : > { %v229_v39 = vsel %vm222_vm0, %v226_v29, %v228_v35  ;;  %v280_v45 = vrot.slane %v261_v34, 1  ;;  %v334_v50 = vrot.slane %v315_v37, 2 }
  0xd4   : > { %v264_v41 = vmul.f32 %v1016_v27, %v229_v39  ;;  %v318_v42 = vmul.f32 %v1018_v30, %v229_v39  ;;  %v225_v43 = vsel %vm222_vm0, %v223_v28, %v224_v38  ;;  %v207_v44 = vpop.xlane.xlu1 %206  ;;  %v227_v46 = vsel %vm222_vm0, %v224_v38, %v226_v29 }
  0xd5   : > { %v262_v47 = vmul.f32 %v1016_v27, %v225_v43  ;;  %v316_v48 = vmul.f32 %v1018_v30, %v225_v43  ;;  %v204_v49 = vpop.xlane.xlu0 %203  ;;  %v254_v51 = vmul.f32 %v1021_v33, %v229_v39  ;;  %v263_v53 = vmul.f32 %v1016_v27, %v227_v46 }
  0xd6   : > { %v285_v52 = vrot.slane %v264_v41, 1  ;;  %v252_v54 = vmul.f32 %v1021_v33, %v225_v43  ;;  %v317_v56 = vmul.f32 %v1018_v30, %v227_v46  ;;  %v339_v58 = vrot.slane %v318_v42, 2 }
  0xd7   : > { %v281_v55 = vrot.slane %v262_v47, 1  ;;  %v335_v57 = vrot.slane %v316_v48, 2  ;;  %v283_v59 = vrot.slane %v263_v53, 1  ;;  %v232_v60 = vrot.slane %v207_v44, 7 }
  0xd8   : > { %v230_v61 = vrot.slane %v204_v49, 7  ;;  %v213_v62 = vpop.xlane.xlu1 %212  ;;  %v253_v63 = vmul.f32 %v1021_v33, %v227_v46  ;;  %v337_v10 = vrot.slane %v317_v56, 2 }
  0xd9   : > { %v282_v3 = vsel %vm279_vm1, %v280_v45, %v281_v55  ;;  %v336_v7 = vsel %vm333_vm2, %v334_v50, %v335_v57  ;;  %v284_v11 = vsel %vm279_vm1, %v281_v55, %v283_v59  ;;  %v286_v16 = vsel %vm279_vm1, %v283_v59, %v285_v52  ;;  %v210_v34 = vpop.xlane.xlu0 %209 }
  0xda   : > { %v305_v17 = vadd.f32 %v282_v3, %v251_v40  ;;  %v231_v22 = vsel %vm222_vm0, %v228_v35, %v230_v61  ;;  %v306_v23 = vadd.f32 %v284_v11, %v252_v54  ;;  %v307_v24 = vadd.f32 %v286_v16, %v253_v63 }
  0xdb   : > { %v338_v25 = vsel %vm333_vm2, %v335_v57, %v337_v10  ;;  %v236_v26 = vrot.slane %v213_v62, 7  ;;  %v340_v28 = vsel %vm333_vm2, %v337_v10, %v339_v58  ;;  %v233_v31 = vsel %vm222_vm0, %v230_v61, %v232_v60 }
  0xdc   : > { %v359_v29 = vadd.f32 %v336_v7, %v305_v17  ;;  %v265_v32 = vmul.f32 %v1016_v27, %v231_v22  ;;  %v360_v36 = vadd.f32 %v338_v25, %v306_v23  ;;  %v361_v37 = vadd.f32 %v340_v28, %v307_v24 }
  0xdd   : > { %v255_v38 = vmul.f32 %v1021_v33, %v231_v22  ;;  %v266_v39 = vmul.f32 %v1016_v27, %v233_v31  ;;  %v319_v41 = vmul.f32 %v1018_v30, %v231_v22  ;;  %v320_v42 = vmul.f32 %v1018_v30, %v233_v31 }
  0xde   : > { %v599_v35 = vmul.f32 -1.442695, %v359_v29  ;;  %v287_v40 = vrot.slane %v265_v32, 1  ;;  %v600_v43 = vmul.f32 -1.442695, %v360_v36  ;;  %v234_v46 = vrot.slane %v210_v34, 7 }
  0xdf   : > { %v601_v44 = vmul.f32 -1.442695, %v361_v37  ;;  %v289_v45 = vrot.slane %v266_v39, 1  ;;  %v341_v48 = vrot.slane %v319_v41, 2  ;;  %v343_v49 = vrot.slane %v320_v42, 2 }
  0xe0   : > { %678 = vpow2.f32 %v599_v35  ;;  %v288_v47 = vsel %vm279_vm1, %v285_v52, %v287_v40  ;;  %v235_v54 = vsel %vm222_vm0, %v232_v60, %v234_v46  ;;  %v256_v52 = vmul.f32 %v1021_v33, %v233_v31 }
  0xe1   : > { %680 = vpow2.f32 %v600_v43  ;;  %v290_v50 = vsel %vm279_vm1, %v287_v40, %v289_v45  ;;  %v308_v53 = vadd.f32 %v288_v47, %v254_v51  ;;  %v342_v56 = vsel %vm333_vm2, %v339_v58, %v341_v48 }
  0xe2   : > { %682 = vpow2.f32 %v601_v44  ;;  %v309_v55 = vadd.f32 %v290_v50, %v255_v38  ;;  %v344_v57 = vsel %vm333_vm2, %v341_v48, %v343_v49  ;;  %v267_v61 = vmul.f32 %v1016_v27, %v235_v54 }
  0xe3   : > { %v362_v59 = vadd.f32 %v342_v56, %v308_v53  ;;  %v321_v62 = vmul.f32 %v1018_v30, %v235_v54  ;;  %v237_v3 = vsel %vm222_vm0, %v234_v46, %v236_v26  ;;  %v248_v51 = vsel %vm222_vm0, %v236_v26, 0.0 }
  0xe4   : > { %v363_v63 = vadd.f32 %v344_v57, %v309_v55  ;;  %v257_v60 = vmul.f32 %v1021_v33, %v235_v54  ;;  %v291_v10 = vrot.slane %v267_v61, 1  ;;  %v268_v16 = vmul.f32 %v1016_v27, %v237_v3 }
  0xe5   : > { %v602_v7 = vmul.f32 -1.442695, %v362_v59  ;;  %v345_v11 = vrot.slane %v321_v62, 2  ;;  %v269_v17 = vmul.f32 %v1016_v27, %v248_v51  ;;  %v322_v22 = vmul.f32 %v1018_v30, %v237_v3 }
  0xe6   : > { %v603_v58 = vmul.f32 -1.442695, %v363_v63  ;;  %v292_v23 = vsel %vm279_vm1, %v289_v45, %v291_v10  ;;  %v258_v24 = vmul.f32 %v1021_v33, %v237_v3  ;;  %v323_v25 = vmul.f32 %v1018_v30, %v248_v51 }
  0xe7   : > { %684 = vpow2.f32 %v602_v7  ;;  %v310_v26 = vadd.f32 %v292_v23, %v256_v52  ;;  %v293_v28 = vrot.slane %v268_v16, 1  ;;  %v295_v29 = vrot.slane %v269_v17, 1 }
  0xe8   : > { %686 = vpow2.f32 %v603_v58  ;;  %v346_v31 = vsel %vm333_vm2, %v343_v49, %v345_v11  ;;  %v347_v32 = vrot.slane %v322_v22, 2  ;;  %v349_v34 = vrot.slane %v323_v25, 2 }
  0xe9   : > { %v364_v36 = vadd.f32 %v346_v31, %v310_v26  ;;  %v294_v27 = vsel %vm279_vm1, %v291_v10, %v293_v28  ;;  %v296_v37 = vsel %vm279_vm1, %v293_v28, %v295_v29 }
  0xea   : > { %v311_v38 = vadd.f32 %v294_v27, %v257_v60  ;;  %v312_v39 = vadd.f32 %v296_v37, %v258_v24  ;;  %v348_v35 = vsel %vm333_vm2, %v345_v11, %v347_v32  ;;  %v350_v33 = vsel %vm333_vm2, %v347_v32, %v349_v34 }
  0xeb   : > { %v604_v30 = vmul.f32 -1.442695, %v364_v36 }
  0xec   : > { %v365_v41 = vadd.f32 %v348_v35, %v311_v38  ;;  %v366_v42 = vadd.f32 %v350_v33, %v312_v39 }
  0xed   : > { %v679_v40 = vpop.eup %678  ;;  %688 = vpow2.f32 %v604_v30 }
  0xee   : > { %v681_v43 = vpop.eup %680  ;;  %v391_v44 = vadd.f32 1.0, %v679_v40  ;;  %v605_v47 = vmul.f32 -1.442695, %v365_v41  ;;  %v606_v49 = vmul.f32 -1.442695, %v366_v42 }
  0xef   : > { %v683_v45 = vpop.eup %682  ;;  %v392_v46 = vadd.f32 1.0, %v681_v43 }
  0xf0   : > { %v393_v48 = vadd.f32 1.0, %v683_v45  ;;  %690 = vrcp.f32 %v391_v44 }
  0xf1   : > { %692 = vrcp.f32 %v392_v46 }
  0xf2   : > { %694 = vpow2.f32 %v605_v47 }
  0xf3   : > { %696 = vrcp.f32 %v393_v48 }
  0xf4   : > { %v685_v50 = vpop.eup %684  ;;  %698 = vpow2.f32 %v606_v49 }
  0xf5   : > { %v394_v53 = vadd.f32 1.0, %v685_v50  ;;  %v687_v54 = vpop.eup %686 }
  0xf6   : > { %v395_v55 = vadd.f32 1.0, %v687_v54 }
  0xf7   : > { %700 = vrcp.f32 %v394_v53 }
  0xf8   : > { %702 = vrcp.f32 %v395_v55 }
  0xfa   : > { %v689_v56 = vpop.eup %688 }
  0xfb   : > { %v396_v59 = vadd.f32 1.0, %v689_v56 }
  0xfd   : > { %v691_v57 = vpop.eup %690  ;;  %704 = vrcp.f32 %v396_v59 }
  0xfe   : > { %v693_v61 = vpop.eup %692  ;;  %417 = vperm.xlu0 %676, %v691_v57  }
  0xff   : > { %422 = vperm.xlu1 %677, %v693_v61   ;;  %v695_v62 = vpop.eup %694 }
 0x100   : > { %v697_v52 = vpop.eup %696  ;;  %v397_v63 = vadd.f32 1.0, %v695_v62 }
 0x101   : > { %v699_v3 = vpop.eup %698 }
 0x102   : > { %v398_v51 = vadd.f32 1.0, %v699_v3  ;;  %706 = vrcp.f32 %v397_v63 }
 0x103   : > { %427 = vperm.xlu1 %677, %v697_v52  }
 0x104   : > { %v701_v7 = vpop.eup %700  ;;  %708 = vrcp.f32 %v398_v51 }
 0x105   : > { %v703_v60 = vpop.eup %702 }
 0x107   : > { %432 = vperm.xlu1 %677, %v701_v7  }
 0x10a   : > { %v705_v10 = vpop.eup %704 }
 0x10b   : > { %437 = vperm.xlu1 %677, %v703_v60  }
 0x10f   : > { %442 = vperm.xlu1 %677, %v705_v10   ;;  %v707_v11 = vpop.eup %706 }
 0x111   : > { %v709_v58 = vpop.eup %708 }
 0x113   : > { %447 = vperm.xlu1 %677, %v707_v11  }
 0x117   : > { %452 = vperm.xlu1 %677, %v709_v58  }
 0x179   : > { %v418_v16 = vpop.permute.xlu0 %417 }
 0x17a   : > { %v423_v17 = vpop.permute.xlu1 %422  ;;  %v455_v22 = vmul.f32 %v418_v16, %v972_v2  ;;  %v456_v23 = vmul.f32 %v418_v16, %v976_v4 }
 0x17b   : > { %v457_v24 = vmul.f32 %v423_v17, %v984_v8  ;;  %v458_v25 = vmul.f32 %v423_v17, %v986_v9 }
 0x17c   : > { %471 = vst [vmem:[%s1079_s7] sm:$0xff] %v455_v22  ;;  %472 = vst [vmem:[%s1079_s7 + $0x8] sm:$0xff] %v456_v23 }
 0x17d   : > { %473 = vst [vmem:[%s1079_s7 + $0x10] sm:$0xff] %v457_v24  ;;  %474 = vst [vmem:[%s1079_s7 + $0x18] sm:$0xff] %v458_v25 }
 0x17e   : > { %v428_v2 = vpop.permute.xlu1 %427 }
 0x17f   : > { %v459_v4 = vmul.f32 %v428_v2, %v968_v0  ;;  %v460_v8 = vmul.f32 %v428_v2, %v970_v1 }
 0x181   : > { %475 = vst [vmem:[%s1079_s7 + $0x20] sm:$0xff] %v459_v4  ;;  %476 = vst [vmem:[%s1079_s7 + $0x28] sm:$0xff] %v460_v8 }
 0x182   : > { %v433_v9 = vpop.permute.xlu1 %432 }
 0x183   : > { %v461_v26 = vmul.f32 %v433_v9, %v978_v5  ;;  %v462_v28 = vmul.f32 %v433_v9, %v980_v6 }
 0x185   : > { %477 = vst [vmem:[%s1079_s7 + $0x30] sm:$0xff] %v461_v26  ;;  %478 = vst [vmem:[%s1079_s7 + $0x38] sm:$0xff] %v462_v28 }
 0x186   : > { %v438_v29 = vpop.permute.xlu1 %437 }
 0x187   : > { %v463_v0 = vmul.f32 %v438_v29, %v996_v14  ;;  %v464_v1 = vmul.f32 %v438_v29, %v998_v15 }
 0x189   : > { %479 = vst [vmem:[%s1079_s7 + $0x40] sm:$0xff] %v463_v0  ;;  %480 = vst [vmem:[%s1079_s7 + $0x48] sm:$0xff] %v464_v1 }
 0x18a   : > { %v443_v31 = vpop.permute.xlu1 %442 }
 0x18b   : > { %v465_v32 = vmul.f32 %v443_v31, %v992_v12  ;;  %v466_v5 = vmul.f32 %v443_v31, %v994_v13 }
 0x18d   : > { %481 = vst [vmem:[%s1079_s7 + $0x50] sm:$0xff] %v465_v32  ;;  %482 = vst [vmem:[%s1079_s7 + $0x58] sm:$0xff] %v466_v5 }
 0x18e   : > { %v448_v6 = vpop.permute.xlu1 %447 }
 0x18f   : > { %v467_v34 = vmul.f32 %v448_v6, %v1008_v20  ;;  %v468_v14 = vmul.f32 %v448_v6, %v1010_v21 }
 0x191   : > { %483 = vst [vmem:[%s1079_s7 + $0x60] sm:$0xff] %v467_v34  ;;  %484 = vst [vmem:[%s1079_s7 + $0x68] sm:$0xff] %v468_v14 }
 0x192   : > { %v453_v15 = vpop.permute.xlu1 %452 }
 0x193   : > { %v469_v12 = vmul.f32 %v453_v15, %v1004_v18  ;;  %v470_v13 = vmul.f32 %v453_v15, %v1006_v19 }
 0x195   : > { %485 = vst [vmem:[%s1079_s7 + $0x70] sm:$0xff] %v469_v12  ;;  %486 = vst [vmem:[%s1079_s7 + $0x78] sm:$0xff] %v470_v13 }
 0x196   : > { %762 = shalt.err (!%p759_p0)
}
 0x197   : > { %s763_s3 = scalar_lea.hbm %s1110_s28, 2048  ;;  %s767_s16 = scalar_lea.hbm %s1161_s2, 4096 }
 0x198   : > { %p764_p3 = scmp.ne.s32.totalorder %s1110_s28, %s763_s3  ;;  %p768_p1 = scmp.lt.s32.totalorder %s1110_s28, %s1161_s2 }
 0x199   : > { %p769_p6 = scmp.lt.s32.totalorder %s767_s16, %s763_s3 }
 0x19a   : > { %p765_p5 = pnand %p764_p3, %p1177_p13 }
 0x19b   : > { %p770_p11 = por %p769_p6, %p768_p1 }
 0x19c   : > { %p766_p4 = pneg %p765_p5 }
 0x19e   : > { %p771_p12 = pnand %p770_p11, %p766_p4 }
 0x1a0   : > { %774 = shalt.err (!%p771_p12)
}
 0x1a1   : > { %s825_s23 = smov 256   ;;  %s826_s5 = smov 16  }
 0x1a2   : > { %620 = dma.vmem_to_hbm [thread:$0]  (%p1177_p13), %s1112_s17, 2048, %s1110_s28, %s488_s13, %s825_s23, %s825_s23, %s826_s5  }
 0x1a3 PF: > { %s516_s7 = sand.u32 1, %s805_s9   ;;  %p1178_p7 = scmp.ne.s32.totalorder %s1169_s22, 0 }
 0x1a4   : > { %p1179_p8 = scmp.ge.s32.totalorder %s817_s12, 2  ;;  %s517_s8 = scalar_lea.sflag [#allocation4], %s516_s7 }
 0x1a6   : > { %p631_p9 = pnand %p1179_p8, %p1178_p7 }
 0x1a8   : > { %p632_p10 = pneg %p631_p9 }
 0x1aa   : > { %800 = dma.done.wait (%p632_p10), %s517_s8, 2048  }
 0x1ab   : > { %802 = vsyncadd (%p632_p10), %s517_s8, 4294965248  ;;  %p16_p2 = scmp.ge.s32.totalorder %s867_s15, 4   ;;  %s1180_s9 = smov %s809_s10 }
 0x1ac   : > { %s1181_s10 = smov %s813_s11  ;;  %s1182_s11 = smov %s879_s18 }
 0x1ad   : > { %s1183_s12 = smov %s867_s15  ;;  %18 = sbr.rel (!%p16_p2) target bundleno = 6 (0x6), region = 78 }
 0x1b2   :  { %522 = vsyncpa [#allocation3], 1 }
 0x1b3   :  { %524 = vsyncpa [#allocation3 + $0x1], 1 }
 0x1b4   :  { %525 = vsyncpa [#allocation4], 1 }
 0x1b5   :  { %527 = vsyncpa [#allocation4 + $0x1], 1 }
 0x1b6   :  { %528 = vsyncpa [#allocation5], 1 }
 0x1b7   :  { %530 = vsyncpa [#allocation5 + $0x1], 1 }

</bundles_post_ra>
